<compile_context>
chip_gen: v7x
topology: tpu7x:2x2x1
jax: 0.10.0
libtpu: 0.0.40
codegen_flags: <defaults>
</compile_context>

<pallas_src>
import functools

import jax
import jax.numpy as jnp
from jax.experimental import pallas as pl
from jax.experimental.pallas import tpu as pltpu


def _make_ce_kernel(C, S, L, exp_bf16):
    """Build the kernel body for a (1, C, S, 128) logits block."""

    def kernel(x_ref, t_ref, out_ref):
        # x_ref:   (1, C, S, 128) logits block, native dtype
        # t_ref:   (1, S, 128)    int32 targets block
        # out_ref: (1, 1, 8, 128) f32 per-block partial NLL sums
        l = pl.program_id(1)
        t = t_ref[0]                                            # (S, 128)

        # Positional validity mask: covers both wrapper padding (L < Lp) and
        # the unspecified contents of a ragged last block.
        row = jax.lax.broadcasted_iota(jnp.int32, (S, 128), 0)
        col = jax.lax.broadcasted_iota(jnp.int32, (S, 128), 1)
        pos = (l * S + row) * 128 + col
        valid = pos < L

        zeros = jnp.zeros((S, 128), jnp.float32)

        if C <= 64:
            # --- streamed, fully unrolled over classes (small/medium C) ---
            # pass 1: running max
            m = x_ref[0, 0].astype(jnp.float32)
            for c in range(1, C):
                m = jnp.maximum(m, x_ref[0, c].astype(jnp.float32))
            # pass 2: running sum-exp + gather of the target logit
            sumexp = zeros
            picked = zeros
            for c in range(C):
                xc = x_ref[0, c].astype(jnp.float32)
                d = xc - m
                if exp_bf16:
                    e = jnp.exp(d.astype(jnp.bfloat16)).astype(jnp.float32)
                else:
                    e = jnp.exp(d)
                sumexp = sumexp + e
                picked = jnp.where(t == c, xc, picked)
        else:
            # --- streamed via fori_loop (keeps compile time bounded) ---
            def max_body(c, m):
                return jnp.maximum(m, x_ref[0, c].astype(jnp.float32))

            m = jax.lax.fori_loop(1, C, max_body,
                                  x_ref[0, 0].astype(jnp.float32))

            def se_body(c, carry):
                sumexp, picked = carry
                xc = x_ref[0, c].astype(jnp.float32)
                d = xc - m
                if exp_bf16:
                    e = jnp.exp(d.astype(jnp.bfloat16)).astype(jnp.float32)
                else:
                    e = jnp.exp(d)
                return sumexp + e, jnp.where(t == c, xc, picked)

            sumexp, picked = jax.lax.fori_loop(0, C, se_body, (zeros, zeros))

        lse = jnp.log(sumexp) + m                               # (S, 128)
        nll = jnp.where(valid, lse - picked, 0.0)               # (S, 128)

        # fold to a single aligned (8, 128) tile (S is a multiple of 8)
        partial = nll.reshape(S // 8, 8, 128).sum(axis=0)       # (8, 128)
        out_ref[...] = partial[None, None]

    return kernel


def cross_entropy_loss_2d(outputs, targets, *, exp_in_bf16=None):
    """outputs: (N, C, H, W) float (any dtype); targets: (N, H, W) int.

    Returns the scalar mean NLL of log_softmax(outputs, axis=1), matching
    torch.nn.NLLLoss()(F.log_softmax(outputs, dim=1), targets).
    """
    N, C, H, W = outputs.shape
    L = H * W
    itemsize = jnp.dtype(outputs.dtype).itemsize

    # --- free reshapes (no transpose); spatial positions become lanes -------
    x = outputs.reshape(N, C, L)
    t = targets.astype(jnp.int32).reshape(N, L)

    # Align L to 128 lanes and at least 8 sublane rows. For typical shapes
    # (H*W a multiple of 128 and >= 1024) this pad never triggers.
    Lp = max(1024, ((L + 127) // 128) * 128)
    if Lp != L:
        # TODO(synk): for non-128-aligned H*W this costs one extra HBM pass
        # over the logits; a 3-D (N,C,L) block layout would avoid it at the
        # cost of in-kernel cross-sublane reductions.
        x = jnp.pad(x, ((0, 0), (0, 0), (0, Lp - L)))
        t = jnp.pad(t, ((0, 0), (0, Lp - L)))
    R = Lp // 128
    x = x.reshape(N, C, R, 128)
    t = t.reshape(N, R, 128)

    # --- generation-aware VMEM budget & tile sizing -------------------------
    try:
        vmem_cap = int(pltpu.get_tpu_info().vmem_capacity_bytes)
    except Exception:
        vmem_cap = 64 * 1024 * 1024            # conservative (v7x per-core)
    vmem_limit = min(int(vmem_cap * 3 // 4), 96 * 1024 * 1024)
    ws_budget = vmem_limit // 2                # double-buffered working-set

    # VMEM bytes per spatial position: 2x double-buffered native-dtype logits,
    # 2x int32 targets, ~6 live f32 (S,128) values in the streamed body.
    bytes_per_pos = 2 * C * itemsize + 2 * 4 + 6 * 4
    s_vmem = max(8, (ws_budget // (128 * bytes_per_pos)) // 8 * 8)

    # Keep enough grid steps for megacore sharding + pipelining, but don't
    # shrink blocks below 1024 rows (>= 512 KiB f32 per contiguous class chunk).
    steps_wanted = max(2, -(-8 // N))
    s_grid = max(1024, (R // steps_wanted) // 8 * 8)

    S = max(8, min(s_vmem, s_grid, (R // 8) * 8))
    num_l = -(-R // S)

    # bf16-exp only pays off where the EUP has a bf16 path (v6e/v7x).
    if exp_in_bf16 is None:
        kind = ""
        try:
            kind = jax.devices()[0].device_kind.lower()
        except Exception:
            pass
        old_gen = any(g in kind for g in ("v2", "v3", "v4", "v5"))
        exp_in_bf16 = (outputs.dtype == jnp.bfloat16) and not old_gen

    kernel = _make_ce_kernel(C, S, L, bool(exp_in_bf16))

    partials = pl.pallas_call(
        kernel,
        out_shape=jax.ShapeDtypeStruct((N, num_l, 8, 128), jnp.float32),
        grid_spec=pltpu.PrefetchScalarGridSpec(
            num_scalar_prefetch=0,
            grid=(N, num_l),
            in_specs=[
                pl.BlockSpec((1, C, S, 128), lambda n, l: (n, 0, l, 0)),
                pl.BlockSpec((1, S, 128), lambda n, l: (n, l, 0)),
            ],
            out_specs=pl.BlockSpec((1, 1, 8, 128), lambda n, l: (n, l, 0, 0)),
        ),
        compiler_params=pltpu.CompilerParams(
            dimension_semantics=("parallel", "parallel"),
            vmem_limit_bytes=int(vmem_limit),
        ),
        cost_estimate=pl.CostEstimate(
            flops=6 * N * C * R * 128,
            transcendentals=N * (C + 1) * R * 128,
            bytes_accessed=N * C * R * 128 * itemsize
            + N * R * 128 * 4
            + N * num_l * 8 * 128 * 4,
        ),
    )(x, t)

    total = jnp.sum(partials)
    return total / jnp.float32(N * L)


def _reference(outputs, targets):
    # pure-JAX reference: mean NLL of log_softmax over the class dim
    logp = jax.nn.log_softmax(outputs.astype(jnp.float32), axis=1)  # (N,C,H,W)
    picked = jnp.take_along_axis(
        logp, targets[:, None, :, :].astype(jnp.int32), axis=1
    )
    return -jnp.mean(picked)


if __name__ == "__main__":
    key = jax.random.PRNGKey(0)
    k1, k2 = jax.random.split(key)

    N, C, H, W = 2, 4, 16, 16
    outputs = jax.random.normal(k1, (N, C, H, W), dtype=jnp.float32)
    targets = jax.random.randint(k2, (N, H, W), 0, C, dtype=jnp.int32)

    loss = cross_entropy_loss_2d(outputs, targets)
    loss = jax.block_until_ready(loss)

    ref = jax.block_until_ready(_reference(outputs, targets))
    assert jnp.allclose(loss, ref, atol=1e-5, rtol=1e-5), (loss, ref)

    print("KERNEL_OK")
</pallas_src>

<mosaic_0001>
module attributes {stable_mosaic.version = 11 : i64} {
  func.func @kernel(%arg0: i32, %arg1: i32, %arg2: memref<1x4x8x128xf32, #tpu.memory_space<vmem>>, %arg3: memref<1x8x128xi32, #tpu.memory_space<vmem>>, %arg4: memref<1x1x8x128xf32, #tpu.memory_space<vmem>>) attributes {dimension_semantics = [#tpu.dimension_semantics<parallel>, #tpu.dimension_semantics<parallel>], iteration_bounds = array<i64: 2, 1>, scalar_prefetch = 0 : i64, scratch_operands = 0 : i64, tpu.core_type = #tpu.core_type<tc>, window_params = [{transform_indices = @transform_0, window_bounds = array<i64: 1, 4, 8, 128>}, {transform_indices = @transform_1, window_bounds = array<i64: 1, 8, 128>}, {transform_indices = @transform_2, window_bounds = array<i64: 1, 1, 8, 128>}]} {
    %c0 = arith.constant 0 : index
    %c0_0 = arith.constant 0 : index
    %c0_1 = arith.constant 0 : index
    %0 = vector.load %arg3[%c0, %c0_0, %c0_1] : memref<1x8x128xi32, #tpu.memory_space<vmem>>, vector<1x8x128xi32>
    %1 = vector.shape_cast %0 : vector<1x8x128xi32> to vector<8x128xi32>
    %2 = tpu.iota {dimensions = array<i32: 0>} : vector<8x128xi32>
    %3 = tpu.iota {dimensions = array<i32: 1>} : vector<8x128xi32>
    %c8_i32 = arith.constant 8 : i32
    %4 = arith.muli %arg1, %c8_i32 : i32
    %5 = vector.broadcast %4 : i32 to vector<8x128xi32>
    %6 = arith.addi %5, %2 : vector<8x128xi32>
    %c128_i32 = arith.constant 128 : i32
    %7 = vector.broadcast %c128_i32 : i32 to vector<8x128xi32>
    %8 = arith.muli %6, %7 : vector<8x128xi32>
    %9 = arith.addi %8, %3 : vector<8x128xi32>
    %c256_i32 = arith.constant 256 : i32
    %10 = vector.broadcast %c256_i32 : i32 to vector<8x128xi32>
    %11 = arith.cmpi slt, %9, %10 : vector<8x128xi32>
    %cst = arith.constant 0.000000e+00 : f32
    %12 = vector.broadcast %cst : f32 to vector<8x128xf32>
    %c0_2 = arith.constant 0 : index
    %c0_3 = arith.constant 0 : index
    %c0_4 = arith.constant 0 : index
    %c0_5 = arith.constant 0 : index
    %13 = vector.load %arg2[%c0_2, %c0_3, %c0_4, %c0_5] : memref<1x4x8x128xf32, #tpu.memory_space<vmem>>, vector<1x1x8x128xf32>
    %14 = vector.shape_cast %13 : vector<1x1x8x128xf32> to vector<8x128xf32>
    %c0_6 = arith.constant 0 : index
    %c1 = arith.constant 1 : index
    %c0_7 = arith.constant 0 : index
    %c0_8 = arith.constant 0 : index
    %15 = vector.load %arg2[%c0_6, %c1, %c0_7, %c0_8] : memref<1x4x8x128xf32, #tpu.memory_space<vmem>>, vector<1x1x8x128xf32>
    %16 = vector.shape_cast %15 : vector<1x1x8x128xf32> to vector<8x128xf32>
    %17 = arith.maximumf %14, %16 : vector<8x128xf32>
    %c0_9 = arith.constant 0 : index
    %c2 = arith.constant 2 : index
    %c0_10 = arith.constant 0 : index
    %c0_11 = arith.constant 0 : index
    %18 = vector.load %arg2[%c0_9, %c2, %c0_10, %c0_11] : memref<1x4x8x128xf32, #tpu.memory_space<vmem>>, vector<1x1x8x128xf32>
    %19 = vector.shape_cast %18 : vector<1x1x8x128xf32> to vector<8x128xf32>
    %20 = arith.maximumf %17, %19 : vector<8x128xf32>
    %c0_12 = arith.constant 0 : index
    %c3 = arith.constant 3 : index
    %c0_13 = arith.constant 0 : index
    %c0_14 = arith.constant 0 : index
    %21 = vector.load %arg2[%c0_12, %c3, %c0_13, %c0_14] : memref<1x4x8x128xf32, #tpu.memory_space<vmem>>, vector<1x1x8x128xf32>
    %22 = vector.shape_cast %21 : vector<1x1x8x128xf32> to vector<8x128xf32>
    %23 = arith.maximumf %20, %22 : vector<8x128xf32>
    %c0_15 = arith.constant 0 : index
    %c0_16 = arith.constant 0 : index
    %c0_17 = arith.constant 0 : index
    %c0_18 = arith.constant 0 : index
    %24 = vector.load %arg2[%c0_15, %c0_16, %c0_17, %c0_18] : memref<1x4x8x128xf32, #tpu.memory_space<vmem>>, vector<1x1x8x128xf32>
    %25 = vector.shape_cast %24 : vector<1x1x8x128xf32> to vector<8x128xf32>
    %26 = arith.subf %25, %23 : vector<8x128xf32>
    %27 = math.exp %26 : vector<8x128xf32>
    %28 = arith.addf %12, %27 : vector<8x128xf32>
    %c0_i32 = arith.constant 0 : i32
    %29 = vector.broadcast %c0_i32 : i32 to vector<8x128xi32>
    %30 = arith.cmpi eq, %1, %29 : vector<8x128xi32>
    %31 = arith.select %30, %25, %12 : vector<8x128xi1>, vector<8x128xf32>
    %c0_19 = arith.constant 0 : index
    %c1_20 = arith.constant 1 : index
    %c0_21 = arith.constant 0 : index
    %c0_22 = arith.constant 0 : index
    %32 = vector.load %arg2[%c0_19, %c1_20, %c0_21, %c0_22] : memref<1x4x8x128xf32, #tpu.memory_space<vmem>>, vector<1x1x8x128xf32>
    %33 = vector.shape_cast %32 : vector<1x1x8x128xf32> to vector<8x128xf32>
    %34 = arith.subf %33, %23 : vector<8x128xf32>
    %35 = math.exp %34 : vector<8x128xf32>
    %36 = arith.addf %28, %35 : vector<8x128xf32>
    %c1_i32 = arith.constant 1 : i32
    %37 = vector.broadcast %c1_i32 : i32 to vector<8x128xi32>
    %38 = arith.cmpi eq, %1, %37 : vector<8x128xi32>
    %39 = arith.select %38, %33, %31 : vector<8x128xi1>, vector<8x128xf32>
    %c0_23 = arith.constant 0 : index
    %c2_24 = arith.constant 2 : index
    %c0_25 = arith.constant 0 : index
    %c0_26 = arith.constant 0 : index
    %40 = vector.load %arg2[%c0_23, %c2_24, %c0_25, %c0_26] : memref<1x4x8x128xf32, #tpu.memory_space<vmem>>, vector<1x1x8x128xf32>
    %41 = vector.shape_cast %40 : vector<1x1x8x128xf32> to vector<8x128xf32>
    %42 = arith.subf %41, %23 : vector<8x128xf32>
    %43 = math.exp %42 : vector<8x128xf32>
    %44 = arith.addf %36, %43 : vector<8x128xf32>
    %c2_i32 = arith.constant 2 : i32
    %45 = vector.broadcast %c2_i32 : i32 to vector<8x128xi32>
    %46 = arith.cmpi eq, %1, %45 : vector<8x128xi32>
    %47 = arith.select %46, %41, %39 : vector<8x128xi1>, vector<8x128xf32>
    %c0_27 = arith.constant 0 : index
    %c3_28 = arith.constant 3 : index
    %c0_29 = arith.constant 0 : index
    %c0_30 = arith.constant 0 : index
    %48 = vector.load %arg2[%c0_27, %c3_28, %c0_29, %c0_30] : memref<1x4x8x128xf32, #tpu.memory_space<vmem>>, vector<1x1x8x128xf32>
    %49 = vector.shape_cast %48 : vector<1x1x8x128xf32> to vector<8x128xf32>
    %50 = arith.subf %49, %23 : vector<8x128xf32>
    %51 = math.exp %50 : vector<8x128xf32>
    %52 = arith.addf %44, %51 : vector<8x128xf32>
    %c3_i32 = arith.constant 3 : i32
    %53 = vector.broadcast %c3_i32 : i32 to vector<8x128xi32>
    %54 = arith.cmpi eq, %1, %53 : vector<8x128xi32>
    %55 = arith.select %54, %49, %47 : vector<8x128xi1>, vector<8x128xf32>
    %56 = math.log %52 : vector<8x128xf32>
    %57 = arith.addf %56, %23 : vector<8x128xf32>
    %58 = arith.subf %57, %55 : vector<8x128xf32>
    %cst_31 = arith.constant 0.000000e+00 : f32
    %59 = vector.broadcast %cst_31 : f32 to vector<8x128xf32>
    %60 = arith.select %11, %58, %59 : vector<8x128xi1>, vector<8x128xf32>
    %61 = vector.shape_cast %60 : vector<8x128xf32> to vector<1x8x128xf32>
    %cst_32 = arith.constant dense<0.000000e+00> : vector<8x128xf32>
    %62 = vector.multi_reduction <add>, %61, %cst_32 [0] : vector<1x8x128xf32> to vector<8x128xf32>
    %63 = vector.shape_cast %62 : vector<8x128xf32> to vector<1x1x8x128xf32>
    %c0_33 = arith.constant 0 : index
    %c0_34 = arith.constant 0 : index
    %c0_35 = arith.constant 0 : index
    %c0_36 = arith.constant 0 : index
    %64 = vector.load %arg4[%c0_33, %c0_34, %c0_35, %c0_36] : memref<1x1x8x128xf32, #tpu.memory_space<vmem>>, vector<1x1x8x128xf32>
    tpu.vector_store %arg4[%c0_33, %c0_34, %c0_35, %c0_36], %63 {strides = array<i32>} : memref<1x1x8x128xf32, #tpu.memory_space<vmem>>, vector<1x1x8x128xf32>,
    return
  }
  func.func @transform_0(%arg0: i32, %arg1: i32) -> (i32, i32, i32, i32) {
    %c0_i32 = arith.constant 0 : i32
    %c0_i32_0 = arith.constant 0 : i32
    %c0_i32_1 = arith.constant 0 : i32
    return %arg0, %c0_i32, %arg1, %c0_i32_0 : i32, i32, i32, i32
  }
  func.func @transform_1(%arg0: i32, %arg1: i32) -> (i32, i32, i32) {
    %c0_i32 = arith.constant 0 : i32
    %c0_i32_0 = arith.constant 0 : i32
    return %arg0, %arg1, %c0_i32 : i32, i32, i32
  }
  func.func @transform_2(%arg0: i32, %arg1: i32) -> (i32, i32, i32, i32) {
    %c0_i32 = arith.constant 0 : i32
    %c0_i32_0 = arith.constant 0 : i32
    %c0_i32_1 = arith.constant 0 : i32
    return %arg0, %arg1, %c0_i32, %c0_i32_0 : i32, i32, i32, i32
  }
}

</mosaic_0001>

<bundles_post_ra>
// kernel: tpu_custom_call.1
= control target key start
LH: loop header
LB: loop body
LE: loop exit
PB: predicated region body
PF: predicated region fallthrough
CT: control target
= control target key end

     0   :  { %7 = vsyncpa [#allocation3], 0  ;;  %s878_s0 = inlined_call_operand.hbm [shape: f32[2,4,8,128], index: 0, kind: input, shape index: {}]   ;;  %s879_s1 = inlined_call_operand.hbm [shape: s32[2,8,128], index: 1, kind: input, shape index: {}]   ;;  %s880_s2 = inlined_call_operand.hbm [shape: f32[2,1,8,128], index: 2, kind: output, shape index: {}]  }
   0x1   :  { %9 = vsyncpa [#allocation3 + $0x1], 0 }
   0x2   :  { %10 = vsyncpa [#allocation6], 0 }
   0x3   :  { %12 = vsyncpa [#allocation6 + $0x1], 0 }
   0x4   :  { %13 = vsyncpa [#allocation4], 0 }
   0x5   :  { %15 = vsyncpa [#allocation4 + $0x1], 0  ;;  %s659_s9 = smov 0   ;;  %s661_s10 = smov 0  }
   0x6   :  { %s663_s11 = smov 0   ;;  %s665_s12 = smov 0  }
   0x7   :  { %s667_s13 = smov 0   ;;  %s669_s14 = smov 0  }
   0x8 LB: > { %s391_s15 = sadd.s32 4294967295, %s637_s14   ;;  %s392_s16 = sadd.s32 4294967294, %s637_s14   ;;  %s637_s14 = sphi %s669_s14, %s21_s14   ;;  %s633_s13 = sphi %s667_s13, %s899_s13   ;;  %s629_s12 = sphi %s665_s12, %s898_s12   ;;  %s625_s11 = sphi %s663_s11, %s897_s11   ;;  %s621_s10 = sphi %s661_s10, %s896_s10   ;;  %s617_s9 = sphi %s659_s9, %s895_s9  }
   0x9   : > { %s33_s17 = sadd.s32 1, %s633_s13  ;;  %s42_s18 = sadd.s32 1, %s625_s11 }
   0xa   : > { %p35_p0 = scmp.ge.s32.totalorder %s33_s17, 2  ;;  %p49_p1 = scmp.ne.s32.totalorder %s625_s11, %s621_s10 }
   0xb   : > { %p50_p2 = scmp.eq.s32.totalorder %s637_s14, 0  ;;  %p55_p3 = scmp.ne.s32.totalorder %s621_s10, %s617_s9 }
   0xc   : > { %s901_s17 = smov (%p35_p0, %s33_s17), 0  ;;  %p56_p5 = scmp.eq.s32.totalorder %s391_s15, 0 }
   0xd   : > { %p700_p4 = por %p50_p2, %p49_p1  ;;  %s37_s20 = ssub.s32 %s633_s13, %s901_s17 }
   0xe   : > { %p109_p6 = scmp.eq.s32.totalorder %s391_s15, 1  ;;  %p40_p7 = scmp.eq.s32.totalorder %s37_s20, 0 }
   0xf   : > { %p706_p8 = por %p56_p5, %p55_p3  ;;  %p115_p10 = scmp.eq.s32.totalorder %s392_s16, 1 }
  0x10   : > { %p710_p9 = por %p109_p6, %p49_p1  ;;  %p429_p13 = scmp.lt.s32.totalorder %s637_s14, 2 }
  0x11   : > { %s884_s21 = scalar_select %p706_p8, 1, 0 }
  0x12   : > { %s885_s22 = scalar_select %p710_p9, 1, 0 }
  0x13   : > { %s715_s23 = scalar_select %p40_p7, %s625_s11, %s42_s18  }
  0x14   : > { %p717_p11 = por %p115_p10, %p55_p3  ;;  %s724_s25 = sand.u32 1, %s625_s11  }
  0x15   : > { %s395_s26 = sshll.u32 %s724_s25, 5  ;;  %s411_s27 = sshll.u32 %s633_s13, 9 }
  0x16   : > { %s886_s24 = scalar_select %p717_p11, 1, 0 }
  0x17   : > { %s731_s30 = scalar_lea.hbm %s878_s0, %s411_s27  ;;  %s139_s3 = scalar_lea.vmem [#allocation2], %s395_s26 }
  0x18   : > { %s147_s4 = sshll.u32 %s139_s3, 4  ;;  %p737_p0 = pnand %p429_p13, %p700_p4  ;;  %s733_s4 = int_to_ptr.vmem [resolvable:$true] %s147_s4 }
  0x19   : > { %s136_s6 = scalar_lea.sflag [#allocation3], %s724_s25  ;;  %s491_s7 = scalar_lea.hbm %s731_s30, 512 }
  0x1a   : > { %p492_p2 = scmp.ne.s32.totalorder %s731_s30, %s491_s7  ;;  %p493_p3 = pneg %p737_p0 }
  0x1b   : > { %s496_s16 = scalar_lea.hbm %s878_s0, 1024  ;;  %p497_p4 = scmp.lt.u32.totalorder %s731_s30, %s878_s0 }
  0x1c   : > { %p494_p5 = pnand %p493_p3, %p492_p2  ;;  %p498_p7 = scmp.lt.u32.totalorder %s496_s16, %s491_s7 }
  0x1d   : > { %p500_p13 = scmp.lt.u32.totalorder %s491_s7, %s731_s30 }
  0x1e   : > { %p495_p6 = pneg %p494_p5  ;;  %p499_p10 = por %p498_p7, %p497_p4 }
  0x20   : > { %p501_p12 = por %p500_p13, %p499_p10 }
  0x22   : > { %p502_p1 = pnand %p501_p12, %p495_p6 }
  0x24   : > { %505 = shalt.err (!%p502_p1)
}
  0x25   : > { %s506_s20 = scalar_lea.vmem %s733_s4, 512  ;;  %s639_s26 = smov [#allocation2]  }
  0x26   : > { %p507_p2 = scmp.ne.s32.totalorder %s733_s4, %s506_s20  ;;  %s511_s27 = sshll.u32 %s639_s26, 4  ;;  %s512_s27 = int_to_ptr.vmem [resolvable:$false] %s511_s27 }
  0x27   : > { %s513_s28 = scalar_lea.vmem %s512_s27, 1024  ;;  %p514_p9 = scmp.lt.s32.totalorder %s733_s4, %s512_s27 }
  0x28   : > { %p509_p5 = pnand %p507_p2, %p493_p3  ;;  %p515_p4 = scmp.lt.s32.totalorder %s513_s28, %s506_s20 }
  0x2a   : > { %p510_p11 = pneg %p509_p5  ;;  %p516_p7 = por %p515_p4, %p514_p9 }
  0x2c   : > { %p517_p10 = pnand %p516_p7, %p510_p11 }
  0x2e   : > { %520 = shalt.err (!%p517_p10)
}
  0x2f   : > { %s640_s29 = smov 128   ;;  %s641_s3 = smov 8  }
  0x30   : > { %421 = dma.hbm_to_vmem [thread:$0]  (!%p737_p0), %s731_s30, 512, %s733_s4, %s136_s6, %s640_s29, %s640_s29, %s641_s3  }
  0x31   : > { %p174_p12 = scmp.lt.s32.totalorder %s637_s14, 3  ;;  %s398_s7 = sshll.u32 %s724_s25, 3 }
  0x32   : > { %s399_s8 = sshll.u32 %s633_s13, 7  ;;  %p888_p9 = scmp.ge.s32.totalorder %s637_s14, 1 }
  0x33   : > { %s782_s19 = scalar_lea.hbm %s879_s1, %s399_s8  ;;  %s161_s20 = scalar_lea.vmem [#allocation5], %s398_s7 }
  0x34   : > { %p775_p11 = pnand %p888_p9, %p174_p12  ;;  %s169_s26 = sshll.u32 %s161_s20, 4  ;;  %s170_s26 = int_to_ptr.vmem [resolvable:$true] %s169_s26 }
  0x35   : > { %s158_s30 = scalar_lea.sflag [#allocation6], %s724_s25  ;;  %s521_s4 = scalar_lea.hbm %s782_s19, 128 }
  0x36   : > { %s889_s15 = scalar_select %p775_p11, 1, 0 }
  0x37   : > { %p522_p1 = scmp.ne.s32.totalorder %s782_s19, %s521_s4  ;;  %s526_s28 = scalar_lea.hbm %s879_s1, 256 }
  0x38   : > { %p527_p2 = scmp.lt.u32.totalorder %s782_s19, %s879_s1  ;;  %p528_p5 = scmp.lt.u32.totalorder %s526_s28, %s521_s4 }
  0x39   : > { %p524_p6 = pnand %p522_p1, %p493_p3  ;;  %p530_p7 = scmp.lt.u32.totalorder %s521_s4, %s782_s19 }
  0x3a   : > { %p529_p4 = por %p528_p5, %p527_p2 }
  0x3b   : > { %p525_p13 = pneg %p524_p6 }
  0x3c   : > { %p531_p10 = por %p530_p7, %p529_p4 }
  0x3e   : > { %p532_p12 = pnand %p531_p10, %p525_p13 }
  0x40   : > { %535 = shalt.err (!%p532_p12)
}
  0x41   : > { %s536_s25 = scalar_lea.vmem %s170_s26, 128  ;;  %s642_s7 = smov [#allocation5]  }
  0x42   : > { %p537_p9 = scmp.ne.s32.totalorder %s170_s26, %s536_s25  ;;  %s541_s8 = sshll.u32 %s642_s7, 4  ;;  %s542_s8 = int_to_ptr.vmem [resolvable:$false] %s541_s8 }
  0x43   : > { %s543_s16 = scalar_lea.vmem %s542_s8, 256  ;;  %p544_p8 = scmp.lt.s32.totalorder %s170_s26, %s542_s8 }
  0x44   : > { %p539_p1 = pnand %p537_p9, %p493_p3  ;;  %p545_p11 = scmp.lt.s32.totalorder %s543_s16, %s536_s25 }
  0x46   : > { %p540_p6 = pneg %p539_p1  ;;  %p546_p2 = por %p545_p11, %p544_p8 }
  0x48   : > { %p547_p5 = pnand %p546_p2, %p540_p6 }
  0x4a   : > { %550 = shalt.err (!%p547_p5)
}
  0x4b   : > { %424 = dma.hbm_to_vmem [thread:$0]  (!%p737_p0), %s782_s19, 128, %s170_s26, %s158_s30  }
  0x4c   : > { %p890_p13 = scmp.ne.s32.totalorder %s889_s15, 0 }
  0x4d   : > { %s807_s18 = sand.u32 (!%p890_p13), 1, %s621_s10   ;;  %p891_p3 = scmp.ne.s32.totalorder (!%p890_p13), %s884_s21, 0 }
  0x4e   : > { %178 = sbr.rel (%p890_p13) target bundleno = 150 (0x96), region = 28  ;;  %s401_s20 = sshll.u32 (!%p890_p13), %s807_s18, 5 }
  0x4f   : > { %s181_s4 = scalar_lea.sflag (!%p890_p13), [#allocation3], %s807_s18  ;;  %s184_s6 = scalar_lea.vmem (!%p890_p13), [#allocation2], %s401_s20 }
  0x55   : > { %604 = dma.done.wait (%p891_p3), %s181_s4, 512  }
  0x56   : > { %606 = vsyncadd (%p891_p3), %s181_s4, 4294966784  ;;  %s402_s5 = sshll.u32 %s807_s18, 3  ;;  %s190_s15 = scalar_lea.sflag [#allocation6], %s807_s18 }
  0x57   : > { %s193_s19 = scalar_lea.vmem [#allocation5], %s402_s5 }
  0x58   : > { %608 = dma.done.wait (%p891_p3), %s190_s15, 128  }
  0x59   : > { %610 = vsyncadd (%p891_p3), %s190_s15, 4294967168  ;;  %v230_v0 = vld [vmem:[%s184_s6] sm:$0xff]  ;;  %v404_v1 = vld [vmem:[%s184_s6 + $0x8] sm:$0xff]  ;;  %v220_v22 = vlaneseq  ;;  %s218_s21 = scalar_lea.vmem [#allocation7], %s402_s5  ;;  %s408_s30 = sshll.u32 %s629_s12, 7 }
  0x5a   : > { %v233_v2 = vmax.f32 %v230_v0, %v404_v1  ;;  %v405_v3 = vld [vmem:[%s184_s6 + $0x10] sm:$0xff]  ;;  %v406_v4 = vld [vmem:[%s184_s6 + $0x18] sm:$0xff]  ;;  %v219_v21 = vld [vmem:[%s193_s19] sm:$0xff]  ;;  %s286_s26 = sshll.u32 %s218_s21, 4  ;;  %s831_s29 = scalar_lea.hbm %s880_s2, %s408_s30  ;;  %s826_s26 = int_to_ptr.vmem [resolvable:$true] %s286_s26 }
  0x5b   : > { %vm244_vm0 = vcmp.eq.s32.totalorder %v219_v21, 0  ;;  %v221_v24 = vshrl.u32 %v220_v22, 7  ;;  %vm250_vm1 = vcmp.eq.s32.totalorder %v219_v21, 1  ;;  %v223_v26 = vand.u32 127, %v220_v22  ;;  %s272_s3 = scalar_lea.sflag [#allocation4], %s807_s18  ;;  %s551_s25 = scalar_lea.vmem %s826_s26, 128 }
  0x5c   : > { %v236_v5 = vmax.f32 %v233_v2, %v405_v3  ;;  %v245_v25 = vsel %vm244_vm0, %v230_v0, 0.0  ;;  %vm256_vm2 = vcmp.eq.s32.totalorder %v219_v21, 2  ;;  %vm262_vm3 = vcmp.eq.s32.totalorder %v219_v21, 3  ;;  %p552_p8 = scmp.ne.s32.totalorder %s826_s26, %s551_s25  ;;  %p892_p0 = scmp.ne.s32.totalorder %s885_s22, 0 }
  0x5d   : > { %v227_v27 = vmul.u32 128, %v221_v24  ;;  %v251_v28 = vsel %vm250_vm1, %v404_v1, %v245_v25  ;;  %s643_s12 = smov [#allocation7]  }
  0x5e   : > { %v239_v6 = vmax.f32 %v236_v5, %v406_v4  ;;  %v257_v29 = vsel %vm256_vm2, %v405_v3, %v251_v28  ;;  %p553_p11 = pnand %p552_p8, %p892_p0  ;;  %s555_s7 = sshll.u32 %s643_s12, 4  ;;  %s556_s7 = int_to_ptr.vmem [resolvable:$false] %s555_s7 }
  0x5f   : > { %v228_v31 = vadd.s32 %v227_v27, %v223_v26  ;;  %v263_v33 = vsel %vm262_vm3, %v406_v4, %v257_v29  ;;  %s557_s8 = scalar_lea.vmem %s556_s7, 256  ;;  %p558_p7 = scmp.lt.s32.totalorder %s826_s26, %s556_s7 }
  0x60   : > { %v240_v7 = vsub.f32 %v230_v0, %v239_v6  ;;  %v246_v8 = vsub.f32 %v404_v1, %v239_v6  ;;  %v252_v9 = vsub.f32 %v405_v3, %v239_v6  ;;  %v258_v10 = vsub.f32 %v406_v4, %v239_v6  ;;  %p554_p4 = pneg %p553_p11  ;;  %p559_p10 = scmp.lt.s32.totalorder %s557_s8, %s551_s25 }
  0x61   : > { %vm229_vm4 = vcmp.lt.s32.totalorder %v228_v31, 256 }
  0x62   : > { %v241_v11 = vmul.f32 1.442695, %v240_v7  ;;  %v247_v12 = vmul.f32 1.442695, %v246_v8  ;;  %v253_v13 = vmul.f32 1.442695, %v252_v9  ;;  %p560_p12 = por %p559_p10, %p558_p7 }
  0x63   : > { %v259_v14 = vmul.f32 1.442695, %v258_v10 }
  0x64   : > { %481 = vpow2.f32 %v241_v11  ;;  %p561_p9 = pnand %p560_p12, %p554_p4 }
  0x65   : > { %483 = vpow2.f32 %v247_v12 }
  0x66   : > { %485 = vpow2.f32 %v253_v13 }
  0x67   : > { %487 = vpow2.f32 %v259_v14 }
  0x6e   : > { %v482_v15 = vpop.eup %481 }
  0x6f   : > { %v484_v16 = vpop.eup %483 }
  0x70   : > { %v486_v17 = vpop.eup %485  ;;  %v249_v18 = vadd.f32 %v484_v16, %v482_v15 }
  0x71   : > { %v488_v19 = vpop.eup %487 }
  0x72   : > { %v255_v20 = vadd.f32 %v486_v17, %v249_v18 }
  0x74   : > { %v261_v23 = vadd.f32 %v488_v19, %v255_v20 }
  0x76   : > { %489 = vlog2.f32 %v261_v23 }
  0x80   : > { %v490_v30 = vpop.eup %489 }
  0x81   : > { %v265_v32 = vmul.f32 0.6931472, %v490_v30 }
  0x83   : > { %v266_v34 = vadd.f32 %v265_v32, %v239_v6 }
  0x85   : > { %v267_v35 = vsub.f32 %v266_v34, %v263_v33 }
  0x87   : > { %v268_v36 = vsel %vm229_vm4, %v267_v35, 0.0 }
  0x88   : > { %270 = vst [vmem:[%s218_s21] sm:$0xff] %v268_v36 }
  0x89   : > { %564 = shalt.err (!%p561_p9)
}
  0x8a   : > { %s565_s16 = scalar_lea.hbm %s831_s29, 128  ;;  %s569_s4 = scalar_lea.hbm %s880_s2, 256 }
  0x8b   : > { %p566_p1 = scmp.ne.s32.totalorder %s831_s29, %s565_s16  ;;  %p570_p5 = scmp.lt.u32.totalorder %s831_s29, %s880_s2 }
  0x8c   : > { %p571_p13 = scmp.lt.u32.totalorder %s569_s4, %s565_s16  ;;  %p573_p8 = scmp.lt.u32.totalorder %s565_s16, %s831_s29 }
  0x8d   : > { %p567_p6 = pnand %p566_p1, %p892_p0 }
  0x8e   : > { %p572_p3 = por %p571_p13, %p570_p5 }
  0x8f   : > { %p568_p2 = pneg %p567_p6 }
  0x90   : > { %p574_p11 = por %p573_p8, %p572_p3 }
  0x92   : > { %p575_p4 = pnand %p574_p11, %p568_p2 }
  0x94   : > { %578 = shalt.err (!%p575_p4)
}
  0x95   : > { %416 = dma.vmem_to_hbm [thread:$0]  (%p892_p0), %s826_s26, 128, %s831_s29, %s272_s3  }
  0x96 PF: > { %s298_s15 = sand.u32 1, %s617_s9   ;;  %p893_p7 = scmp.ne.s32.totalorder %s886_s24, 0 }
  0x97   : > { %p894_p10 = scmp.ge.s32.totalorder %s637_s14, 2  ;;  %s299_s19 = scalar_lea.sflag [#allocation4], %s298_s15 }
  0x99   : > { %p426_p12 = pnand %p894_p10, %p893_p7 }
  0x9b   : > { %612 = dma.done.wait (!%p426_p12), %s299_s19, 128  }
  0x9c   : > { %614 = vsyncadd (!%p426_p12), %s299_s19, 4294967168  ;;  %s21_s14 = sadd.s32 1, %s637_s14   ;;  %s895_s9 = smov %s621_s10 }
  0x9d   : > { %p18_p9 = scmp.ge.s32.totalorder %s21_s14, 4   ;;  %s896_s10 = smov %s625_s11 }
  0x9e   : > { %s897_s11 = smov %s715_s23  ;;  %s898_s12 = smov %s633_s13 }
  0x9f   : > { %s899_s13 = smov %s901_s17  ;;  %20 = sbr.rel (!%p18_p9) target bundleno = 8 (0x8), region = 89 }
  0xa6   :  { %304 = vsyncpa [#allocation3], 1 }
  0xa7   :  { %306 = vsyncpa [#allocation3 + $0x1], 1 }
  0xa8   :  { %307 = vsyncpa [#allocation6], 1 }
  0xa9   :  { %309 = vsyncpa [#allocation6 + $0x1], 1 }
  0xaa   :  { %310 = vsyncpa [#allocation4], 1 }
  0xab   :  { %312 = vsyncpa [#allocation4 + $0x1], 1 }

</bundles_post_ra>
